<compile_context>
chip_gen: v7x
topology: tpu7x:2x2x1
jax: 0.10.0
libtpu: 0.0.40
codegen_flags: <defaults>
</compile_context>

<pallas_src>
import math
import functools

import jax
import jax.numpy as jnp
import numpy as np
from jax import lax
from jax.experimental import pallas as pl
from jax.experimental.pallas import tpu as pltpu


# ---------------------------------------------------------------------------
# Fused kernel: QKV projection + per-head attention + output projection.
# ---------------------------------------------------------------------------
def _fused_attention_core(x_ref, wqkv_ref, bqkv_ref, wo_ref, bo_ref,
                          out_ref, probs_ref, acc_ref, *,
                          num_heads, head_dim, hidden, scale, matmul_dtype):
    x = x_ref[0]                                        # (S, H)
    if matmul_dtype is not None:
        x = x.astype(matmul_dtype)
    wqkv = wqkv_ref[...]                                # (H, 3H) — bf16 if requested (host-cast)

    # Single full-width projection; f32 accumulation; one bias broadcast.
    qkv = jnp.dot(x, wqkv, preferred_element_type=jnp.float32) + bqkv_ref[0]   # (S, 3H) f32

    wo = wo_ref[...]                                    # (H, H)

    for h in range(num_heads):                          # static unrolled loop
        lo = h * head_dim
        q = qkv[:, lo:lo + head_dim]                                   # (S, d) f32
        k = qkv[:, hidden + lo:hidden + lo + head_dim]                 # (S, d) f32
        v = qkv[:, 2 * hidden + lo:2 * hidden + lo + head_dim]         # (S, d) f32

        qm, km = q, k
        if matmul_dtype is not None:
            qm = qm.astype(matmul_dtype)
            km = km.astype(matmul_dtype)

        # Contract over the last dims of Q and K directly (no K transpose).
        scores = lax.dot_general(qm, km, (((1,), (1,)), ((), ())),
                                 preferred_element_type=jnp.float32) * scale   # (S, S)

        # Softmax kept in f32 (v5e has no bf16 VALU/EUP).
        m = jnp.max(scores, axis=-1, keepdims=True)
        e = jnp.exp(scores - m)
        denom = jnp.sum(e, axis=-1, keepdims=True)
        probs = e * pl.reciprocal(denom, approx=False)

        if probs_ref is not None:
            probs_ref[0, h] = probs.astype(probs_ref.dtype)

        pm, vm = probs, v
        if matmul_dtype is not None:
            pm = pm.astype(matmul_dtype)
            vm = vm.astype(matmul_dtype)
        ctx = jnp.dot(pm, vm, preferred_element_type=jnp.float32)              # (S, d)

        if matmul_dtype is not None:
            ctx = ctx.astype(matmul_dtype)
        # Per-head slice of Wo: sum_h ctx_h @ Wo_h == concat_h(ctx_h) @ Wo.
        part = jnp.dot(ctx, wo[lo:lo + head_dim, :],
                       preferred_element_type=jnp.float32)                     # (S, H)
        if h == 0:
            acc_ref[...] = part
        else:
            acc_ref[...] += part

    out_ref[0] = (acc_ref[...] + bo_ref[0]).astype(out_ref.dtype)


def _make_fused_kernel(return_probs, **kw):
    if return_probs:
        def kernel(x_ref, wqkv_ref, bqkv_ref, wo_ref, bo_ref,
                   out_ref, probs_ref, acc_ref):
            _fused_attention_core(x_ref, wqkv_ref, bqkv_ref, wo_ref, bo_ref,
                                  out_ref, probs_ref, acc_ref, **kw)
    else:
        def kernel(x_ref, wqkv_ref, bqkv_ref, wo_ref, bo_ref,
                   out_ref, acc_ref):
            _fused_attention_core(x_ref, wqkv_ref, bqkv_ref, wo_ref, bo_ref,
                                  out_ref, None, acc_ref, **kw)
    return kernel


# ---------------------------------------------------------------------------
# Host-side weight preparation (done ONCE, not per forward call).
# ---------------------------------------------------------------------------
def prepare_attention_params(params, *, matmul_dtype=None):
    """params: (wq, bq, wk, bk, wv, bv, wo, bo), weights pre-transposed so that
    y = x @ W + b (== torch's x @ W.T + b).  Fuses QKV weights/biases and
    optionally casts weights to the MXU dtype host-side."""
    wq, bq, wk, bk, wv, bv, wo, bo = params
    wqkv = jnp.concatenate([wq, wk, wv], axis=1)            # (H, 3H)
    bqkv = jnp.concatenate([bq, bk, bv], axis=0).reshape(1, -1)
    bo2 = bo.reshape(1, -1)
    if matmul_dtype is not None:
        wqkv = wqkv.astype(matmul_dtype)
        wo = wo.astype(matmul_dtype)
    return wqkv, bqkv, wo, bo2


# ---------------------------------------------------------------------------
# Wrapper
# ---------------------------------------------------------------------------
def attention_forward(x, prepared_params, *, num_heads, return_probs=True,
                      matmul_dtype=None, probs_dtype=jnp.float32):
    """x: (B, S, H).  Returns (attention_output (B,S,H),
    attention_probs (B,nh,S,S) or None).  Note: when probs_dtype is lower
    precision than f32, the returned weights are rounded copies of the f32
    probabilities actually used to compute the context."""
    B, S, H = x.shape
    d = H // num_heads
    assert num_heads * d == H

    wqkv, bqkv, wo, bo = prepared_params

    kernel = _make_fused_kernel(
        return_probs, num_heads=num_heads, head_dim=d, hidden=H,
        scale=1.0 / math.sqrt(d), matmul_dtype=matmul_dtype)

    in_specs = [
        pl.BlockSpec((1, S, H), lambda b: (b, 0, 0)),        # x
        pl.BlockSpec((H, 3 * H), lambda b: (0, 0)),          # Wqkv (resident across grid)
        pl.BlockSpec((1, 3 * H), lambda b: (0, 0)),          # bqkv
        pl.BlockSpec((H, H), lambda b: (0, 0)),              # Wo
        pl.BlockSpec((1, H), lambda b: (0, 0)),              # bo
    ]
    out_block = pl.BlockSpec((1, S, H), lambda b: (b, 0, 0))

    if return_probs:
        out_shape = (jax.ShapeDtypeStruct((B, S, H), x.dtype),
                     jax.ShapeDtypeStruct((B, num_heads, S, S), probs_dtype))
        out_specs = [out_block,
                     pl.BlockSpec((1, num_heads, S, S), lambda b: (b, 0, 0, 0))]
    else:
        out_shape = jax.ShapeDtypeStruct((B, S, H), x.dtype)
        out_specs = out_block

    result = pl.pallas_call(
        kernel,
        out_shape=out_shape,
        grid_spec=pltpu.PrefetchScalarGridSpec(
            num_scalar_prefetch=0,
            grid=(B,),
            in_specs=in_specs,
            out_specs=out_specs,
            scratch_shapes=[pltpu.VMEM((S, H), jnp.float32)],   # out-proj accumulator
        ),
        # Keep the batch axis "parallel" so v7x's 2 TensorCores both stay busy.
        compiler_params=pltpu.CompilerParams(dimension_semantics=("parallel",)),
    )(x, wqkv, bqkv, wo, bo)

    if return_probs:
        out, probs = result
        return out, probs
    return result, None


# ---------------------------------------------------------------------------
# Plain-JAX reference (mirrors the PyTorch forward) for a correctness check.
# ---------------------------------------------------------------------------
def attention_reference(x, params, *, num_heads):
    wq, bq, wk, bk, wv, bv, wo, bo = params
    B, S, H = x.shape
    d = H // num_heads

    def heads(t):  # (B,S,H) -> (B,nh,S,d)
        return t.reshape(B, S, num_heads, d).transpose(0, 2, 1, 3)

    q = heads(x @ wq + bq)
    k = heads(x @ wk + bk)
    v = heads(x @ wv + bv)
    scores = jnp.einsum("bhqd,bhkd->bhqk", q, k) / math.sqrt(d)
    probs = jax.nn.softmax(scores, axis=-1)
    ctx = jnp.einsum("bhqk,bhkd->bhqd", probs, v)
    ctx = ctx.transpose(0, 2, 1, 3).reshape(B, S, H)
    out = ctx @ wo + bo
    return out, probs


if __name__ == "__main__":
    # Small config: batch=2, seq=8, hidden=32, num_heads=4 (head_dim=8)
    B, S, H = 2, 8, 32
    NUM_HEADS = 4

    key = jax.random.PRNGKey(0)
    ks = jax.random.split(key, 9)
    scale = 0.02
    wq = scale * jax.random.normal(ks[0], (H, H), jnp.float32)
    bq = scale * jax.random.normal(ks[1], (H,), jnp.float32)
    wk = scale * jax.random.normal(ks[2], (H, H), jnp.float32)
    bk = scale * jax.random.normal(ks[3], (H,), jnp.float32)
    wv = scale * jax.random.normal(ks[4], (H, H), jnp.float32)
    bv = scale * jax.random.normal(ks[5], (H,), jnp.float32)
    wo = scale * jax.random.normal(ks[6], (H, H), jnp.float32)
    bo = scale * jax.random.normal(ks[7], (H,), jnp.float32)
    params = (wq, bq, wk, bk, wv, bv, wo, bo)

    x = jax.random.normal(ks[8], (B, S, H), jnp.float32)

    ref_out, ref_w = attention_reference(x, params, num_heads=NUM_HEADS)

    # ---- f32 path, with attention-weights output (vis=True) ----
    prepared_f32 = prepare_attention_params(params)          # hoisted, done once
    out, weights = attention_forward(x, prepared_f32, num_heads=NUM_HEADS,
                                     return_probs=True)
    out = jax.block_until_ready(out)
    weights = jax.block_until_ready(weights)
    np.testing.assert_allclose(np.asarray(out), np.asarray(ref_out),
                               rtol=1e-5, atol=1e-5)
    np.testing.assert_allclose(np.asarray(weights), np.asarray(ref_w),
                               rtol=1e-5, atol=1e-5)

    # ---- f32 path, probs writeback skipped (vis=False) ----
    out2, weights2 = attention_forward(x, prepared_f32, num_heads=NUM_HEADS,
                                       return_probs=False)
    out2 = jax.block_until_ready(out2)
    assert weights2 is None
    np.testing.assert_allclose(np.asarray(out2), np.asarray(ref_out),
                               rtol=1e-5, atol=1e-5)

    # ---- bf16 MXU-operand fast path (weights host-cast; softmax stays f32) ----
    prepared_bf16 = prepare_attention_params(params, matmul_dtype=jnp.bfloat16)
    out3, _ = attention_forward(x, prepared_bf16, num_heads=NUM_HEADS,
                                return_probs=False, matmul_dtype=jnp.bfloat16)
    out3 = jax.block_until_ready(out3)
    np.testing.assert_allclose(np.asarray(out3), np.asarray(ref_out),
                               rtol=5e-2, atol=5e-2)

    print("KERNEL_OK")
</pallas_src>

<mosaic_0001>
module attributes {stable_mosaic.version = 11 : i64} {
  func.func @kernel(%arg0: i32, %arg1: memref<1x8x32xf32, #tpu.memory_space<vmem>>, %arg2: memref<32x96xf32, #tpu.memory_space<vmem>>, %arg3: memref<1x96xf32, #tpu.memory_space<vmem>>, %arg4: memref<32x32xf32, #tpu.memory_space<vmem>>, %arg5: memref<1x32xf32, #tpu.memory_space<vmem>>, %arg6: memref<1x8x32xf32, #tpu.memory_space<vmem>>, %arg7: memref<1x4x8x8xf32, #tpu.memory_space<vmem>>, %arg8: memref<8x32xf32, #tpu.memory_space<vmem>>) attributes {dimension_semantics = [#tpu.dimension_semantics<parallel>], iteration_bounds = array<i64: 2>, scalar_prefetch = 0 : i64, scratch_operands = 1 : i64, tpu.core_type = #tpu.core_type<tc>, window_params = [{transform_indices = @transform_0, window_bounds = array<i64: 1, 8, 32>}, {pipeline_mode = #tpu.pipeline_mode<synchronous>, transform_indices = @transform_1, window_bounds = array<i64: 32, 96>}, {pipeline_mode = #tpu.pipeline_mode<synchronous>, transform_indices = @transform_2, window_bounds = array<i64: 1, 96>}, {pipeline_mode = #tpu.pipeline_mode<synchronous>, transform_indices = @transform_3, window_bounds = array<i64: 32, 32>}, {pipeline_mode = #tpu.pipeline_mode<synchronous>, transform_indices = @transform_4, window_bounds = array<i64: 1, 32>}, {transform_indices = @transform_5, window_bounds = array<i64: 1, 8, 32>}, {transform_indices = @transform_6, window_bounds = array<i64: 1, 4, 8, 8>}]} {
    %c0 = arith.constant 0 : index
    %c0_0 = arith.constant 0 : index
    %c0_1 = arith.constant 0 : index
    %0 = vector.load %arg1[%c0, %c0_0, %c0_1] : memref<1x8x32xf32, #tpu.memory_space<vmem>>, vector<1x8x32xf32>
    %1 = vector.shape_cast %0 : vector<1x8x32xf32> to vector<8x32xf32>
    %c0_2 = arith.constant 0 : index
    %c0_3 = arith.constant 0 : index
    %2 = vector.load %arg2[%c0_2, %c0_3] : memref<32x96xf32, #tpu.memory_space<vmem>>, vector<32x96xf32>
    %cst = arith.constant dense<0.000000e+00> : vector<8x96xf32>
    %3 = tpu.matmul %1, %2, %cst {dimension_numbers = #tpu.dot_dimension_numbers<[1], [0], [0], [1], [0, 0, 1, 1], [], []>} : vector<8x32xf32>, vector<32x96xf32>, vector<8x96xf32> -> vector<8x96xf32>
    %c0_4 = arith.constant 0 : index
    %c0_5 = arith.constant 0 : index
    %4 = vector.load %arg3[%c0_4, %c0_5] : memref<1x96xf32, #tpu.memory_space<vmem>>, vector<1x96xf32>
    %5 = vector.shape_cast %4 : vector<1x96xf32> to vector<96xf32>
    %6 = vector.shape_cast %5 : vector<96xf32> to vector<1x96xf32>
    %7 = vector.broadcast %6 : vector<1x96xf32> to vector<8x96xf32>
    %8 = arith.addf %3, %7 : vector<8x96xf32>
    %c0_6 = arith.constant 0 : index
    %c0_7 = arith.constant 0 : index
    %9 = vector.load %arg4[%c0_6, %c0_7] : memref<32x32xf32, #tpu.memory_space<vmem>>, vector<32x32xf32>
    %10 = vector.extract_strided_slice %8 {offsets = [0, 0], sizes = [8, 8], strides = [1, 1]} : vector<8x96xf32> to vector<8x8xf32>
    %11 = vector.extract_strided_slice %8 {offsets = [0, 32], sizes = [8, 8], strides = [1, 1]} : vector<8x96xf32> to vector<8x8xf32>
    %12 = vector.extract_strided_slice %8 {offsets = [0, 64], sizes = [8, 8], strides = [1, 1]} : vector<8x96xf32> to vector<8x8xf32>
    %cst_8 = arith.constant dense<0.000000e+00> : vector<8x8xf32>
    %13 = tpu.matmul %10, %11, %cst_8 {dimension_numbers = #tpu.dot_dimension_numbers<[1], [1], [0], [0], [0, 0, 1, 0], [], []>} : vector<8x8xf32>, vector<8x8xf32>, vector<8x8xf32> -> vector<8x8xf32>
    %cst_9 = arith.constant 0.353553385 : f32
    %14 = vector.broadcast %cst_9 : f32 to vector<8x8xf32>
    %15 = arith.mulf %13, %14 : vector<8x8xf32>
    %cst_10 = arith.constant dense<0xFF800000> : vector<8xf32>
    %16 = vector.multi_reduction <maximumf>, %15, %cst_10 [1] : vector<8x8xf32> to vector<8xf32>
    %17 = vector.shape_cast %16 : vector<8xf32> to vector<8x1xf32>
    %18 = vector.broadcast %17 : vector<8x1xf32> to vector<8x8xf32>
    %19 = arith.subf %15, %18 : vector<8x8xf32>
    %20 = math.exp %19 : vector<8x8xf32>
    %cst_11 = arith.constant dense<0.000000e+00> : vector<8xf32>
    %21 = vector.multi_reduction <add>, %20, %cst_11 [1] : vector<8x8xf32> to vector<8xf32>
    %22 = vector.shape_cast %21 : vector<8xf32> to vector<8x1xf32>
    %23 = tpu.reciprocal %22 : vector<8x1xf32> -> vector<8x1xf32>
    %24 = vector.broadcast %23 : vector<8x1xf32> to vector<8x8xf32>
    %25 = arith.mulf %20, %24 : vector<8x8xf32>
    %c0_12 = arith.constant 0 : index
    %c0_13 = arith.constant 0 : index
    %c0_14 = arith.constant 0 : index
    %c0_15 = arith.constant 0 : index
    %26 = vector.load %arg7[%c0_12, %c0_13, %c0_14, %c0_15] : memref<1x4x8x8xf32, #tpu.memory_space<vmem>>, vector<1x1x8x8xf32>
    %27 = vector.shape_cast %26 : vector<1x1x8x8xf32> to vector<8x8xf32>
    %28 = vector.shape_cast %25 : vector<8x8xf32> to vector<1x1x8x8xf32>
    tpu.vector_store %arg7[%c0_12, %c0_13, %c0_14, %c0_15], %28 {strides = array<i32>} : memref<1x4x8x8xf32, #tpu.memory_space<vmem>>, vector<1x1x8x8xf32>,
    %cst_16 = arith.constant dense<0.000000e+00> : vector<8x8xf32>
    %29 = tpu.matmul %25, %12, %cst_16 {dimension_numbers = #tpu.dot_dimension_numbers<[1], [0], [0], [1], [0, 0, 1, 1], [], []>} : vector<8x8xf32>, vector<8x8xf32>, vector<8x8xf32> -> vector<8x8xf32>
    %30 = vector.extract_strided_slice %9 {offsets = [0, 0], sizes = [8, 32], strides = [1, 1]} : vector<32x32xf32> to vector<8x32xf32>
    %cst_17 = arith.constant dense<0.000000e+00> : vector<8x32xf32>
    %31 = tpu.matmul %29, %30, %cst_17 {dimension_numbers = #tpu.dot_dimension_numbers<[1], [0], [0], [1], [0, 0, 1, 1], [], []>} : vector<8x8xf32>, vector<8x32xf32>, vector<8x32xf32> -> vector<8x32xf32>
    %c0_18 = arith.constant 0 : index
    %c0_19 = arith.constant 0 : index
    %32 = vector.load %arg8[%c0_18, %c0_19] : memref<8x32xf32, #tpu.memory_space<vmem>>, vector<8x32xf32>
    tpu.vector_store %arg8[%c0_18, %c0_19], %31 {strides = array<i32>} : memref<8x32xf32, #tpu.memory_space<vmem>>, vector<8x32xf32>,
    %33 = vector.extract_strided_slice %8 {offsets = [0, 8], sizes = [8, 8], strides = [1, 1]} : vector<8x96xf32> to vector<8x8xf32>
    %34 = vector.extract_strided_slice %8 {offsets = [0, 40], sizes = [8, 8], strides = [1, 1]} : vector<8x96xf32> to vector<8x8xf32>
    %35 = vector.extract_strided_slice %8 {offsets = [0, 72], sizes = [8, 8], strides = [1, 1]} : vector<8x96xf32> to vector<8x8xf32>
    %cst_20 = arith.constant dense<0.000000e+00> : vector<8x8xf32>
    %36 = tpu.matmul %33, %34, %cst_20 {dimension_numbers = #tpu.dot_dimension_numbers<[1], [1], [0], [0], [0, 0, 1, 0], [], []>} : vector<8x8xf32>, vector<8x8xf32>, vector<8x8xf32> -> vector<8x8xf32>
    %cst_21 = arith.constant 0.353553385 : f32
    %37 = vector.broadcast %cst_21 : f32 to vector<8x8xf32>
    %38 = arith.mulf %36, %37 : vector<8x8xf32>
    %cst_22 = arith.constant dense<0xFF800000> : vector<8xf32>
    %39 = vector.multi_reduction <maximumf>, %38, %cst_22 [1] : vector<8x8xf32> to vector<8xf32>
    %40 = vector.shape_cast %39 : vector<8xf32> to vector<8x1xf32>
    %41 = vector.broadcast %40 : vector<8x1xf32> to vector<8x8xf32>
    %42 = arith.subf %38, %41 : vector<8x8xf32>
    %43 = math.exp %42 : vector<8x8xf32>
    %cst_23 = arith.constant dense<0.000000e+00> : vector<8xf32>
    %44 = vector.multi_reduction <add>, %43, %cst_23 [1] : vector<8x8xf32> to vector<8xf32>
    %45 = vector.shape_cast %44 : vector<8xf32> to vector<8x1xf32>
    %46 = tpu.reciprocal %45 : vector<8x1xf32> -> vector<8x1xf32>
    %47 = vector.broadcast %46 : vector<8x1xf32> to vector<8x8xf32>
    %48 = arith.mulf %43, %47 : vector<8x8xf32>
    %c0_24 = arith.constant 0 : index
    %c1 = arith.constant 1 : index
    %c0_25 = arith.constant 0 : index
    %c0_26 = arith.constant 0 : index
    %49 = vector.load %arg7[%c0_24, %c1, %c0_25, %c0_26] : memref<1x4x8x8xf32, #tpu.memory_space<vmem>>, vector<1x1x8x8xf32>
    %50 = vector.shape_cast %49 : vector<1x1x8x8xf32> to vector<8x8xf32>
    %51 = vector.shape_cast %48 : vector<8x8xf32> to vector<1x1x8x8xf32>
    tpu.vector_store %arg7[%c0_24, %c1, %c0_25, %c0_26], %51 {strides = array<i32>} : memref<1x4x8x8xf32, #tpu.memory_space<vmem>>, vector<1x1x8x8xf32>,
    %cst_27 = arith.constant dense<0.000000e+00> : vector<8x8xf32>
    %52 = tpu.matmul %48, %35, %cst_27 {dimension_numbers = #tpu.dot_dimension_numbers<[1], [0], [0], [1], [0, 0, 1, 1], [], []>} : vector<8x8xf32>, vector<8x8xf32>, vector<8x8xf32> -> vector<8x8xf32>
    %53 = vector.extract_strided_slice %9 {offsets = [8, 0], sizes = [8, 32], strides = [1, 1]} : vector<32x32xf32> to vector<8x32xf32>
    %cst_28 = arith.constant dense<0.000000e+00> : vector<8x32xf32>
    %54 = tpu.matmul %52, %53, %cst_28 {dimension_numbers = #tpu.dot_dimension_numbers<[1], [0], [0], [1], [0, 0, 1, 1], [], []>} : vector<8x8xf32>, vector<8x32xf32>, vector<8x32xf32> -> vector<8x32xf32>
    %c0_29 = arith.constant 0 : index
    %c0_30 = arith.constant 0 : index
    %55 = vector.load %arg8[%c0_29, %c0_30] : memref<8x32xf32, #tpu.memory_space<vmem>>, vector<8x32xf32>
    %56 = arith.addf %55, %54 : vector<8x32xf32>
    %c0_31 = arith.constant 0 : index
    %c0_32 = arith.constant 0 : index
    %57 = vector.load %arg8[%c0_31, %c0_32] : memref<8x32xf32, #tpu.memory_space<vmem>>, vector<8x32xf32>
    tpu.vector_store %arg8[%c0_31, %c0_32], %56 {strides = array<i32>} : memref<8x32xf32, #tpu.memory_space<vmem>>, vector<8x32xf32>,
    %58 = vector.extract_strided_slice %8 {offsets = [0, 16], sizes = [8, 8], strides = [1, 1]} : vector<8x96xf32> to vector<8x8xf32>
    %59 = vector.extract_strided_slice %8 {offsets = [0, 48], sizes = [8, 8], strides = [1, 1]} : vector<8x96xf32> to vector<8x8xf32>
    %60 = vector.extract_strided_slice %8 {offsets = [0, 80], sizes = [8, 8], strides = [1, 1]} : vector<8x96xf32> to vector<8x8xf32>
    %cst_33 = arith.constant dense<0.000000e+00> : vector<8x8xf32>
    %61 = tpu.matmul %58, %59, %cst_33 {dimension_numbers = #tpu.dot_dimension_numbers<[1], [1], [0], [0], [0, 0, 1, 0], [], []>} : vector<8x8xf32>, vector<8x8xf32>, vector<8x8xf32> -> vector<8x8xf32>
    %cst_34 = arith.constant 0.353553385 : f32
    %62 = vector.broadcast %cst_34 : f32 to vector<8x8xf32>
    %63 = arith.mulf %61, %62 : vector<8x8xf32>
    %cst_35 = arith.constant dense<0xFF800000> : vector<8xf32>
    %64 = vector.multi_reduction <maximumf>, %63, %cst_35 [1] : vector<8x8xf32> to vector<8xf32>
    %65 = vector.shape_cast %64 : vector<8xf32> to vector<8x1xf32>
    %66 = vector.broadcast %65 : vector<8x1xf32> to vector<8x8xf32>
    %67 = arith.subf %63, %66 : vector<8x8xf32>
    %68 = math.exp %67 : vector<8x8xf32>
    %cst_36 = arith.constant dense<0.000000e+00> : vector<8xf32>
    %69 = vector.multi_reduction <add>, %68, %cst_36 [1] : vector<8x8xf32> to vector<8xf32>
    %70 = vector.shape_cast %69 : vector<8xf32> to vector<8x1xf32>
    %71 = tpu.reciprocal %70 : vector<8x1xf32> -> vector<8x1xf32>
    %72 = vector.broadcast %71 : vector<8x1xf32> to vector<8x8xf32>
    %73 = arith.mulf %68, %72 : vector<8x8xf32>
    %c0_37 = arith.constant 0 : index
    %c2 = arith.constant 2 : index
    %c0_38 = arith.constant 0 : index
    %c0_39 = arith.constant 0 : index
    %74 = vector.load %arg7[%c0_37, %c2, %c0_38, %c0_39] : memref<1x4x8x8xf32, #tpu.memory_space<vmem>>, vector<1x1x8x8xf32>
    %75 = vector.shape_cast %74 : vector<1x1x8x8xf32> to vector<8x8xf32>
    %76 = vector.shape_cast %73 : vector<8x8xf32> to vector<1x1x8x8xf32>
    tpu.vector_store %arg7[%c0_37, %c2, %c0_38, %c0_39], %76 {strides = array<i32>} : memref<1x4x8x8xf32, #tpu.memory_space<vmem>>, vector<1x1x8x8xf32>,
    %cst_40 = arith.constant dense<0.000000e+00> : vector<8x8xf32>
    %77 = tpu.matmul %73, %60, %cst_40 {dimension_numbers = #tpu.dot_dimension_numbers<[1], [0], [0], [1], [0, 0, 1, 1], [], []>} : vector<8x8xf32>, vector<8x8xf32>, vector<8x8xf32> -> vector<8x8xf32>
    %78 = vector.extract_strided_slice %9 {offsets = [16, 0], sizes = [8, 32], strides = [1, 1]} : vector<32x32xf32> to vector<8x32xf32>
    %cst_41 = arith.constant dense<0.000000e+00> : vector<8x32xf32>
    %79 = tpu.matmul %77, %78, %cst_41 {dimension_numbers = #tpu.dot_dimension_numbers<[1], [0], [0], [1], [0, 0, 1, 1], [], []>} : vector<8x8xf32>, vector<8x32xf32>, vector<8x32xf32> -> vector<8x32xf32>
    %c0_42 = arith.constant 0 : index
    %c0_43 = arith.constant 0 : index
    %80 = vector.load %arg8[%c0_42, %c0_43] : memref<8x32xf32, #tpu.memory_space<vmem>>, vector<8x32xf32>
    %81 = arith.addf %80, %79 : vector<8x32xf32>
    %c0_44 = arith.constant 0 : index
    %c0_45 = arith.constant 0 : index
    %82 = vector.load %arg8[%c0_44, %c0_45] : memref<8x32xf32, #tpu.memory_space<vmem>>, vector<8x32xf32>
    tpu.vector_store %arg8[%c0_44, %c0_45], %81 {strides = array<i32>} : memref<8x32xf32, #tpu.memory_space<vmem>>, vector<8x32xf32>,
    %83 = vector.extract_strided_slice %8 {offsets = [0, 24], sizes = [8, 8], strides = [1, 1]} : vector<8x96xf32> to vector<8x8xf32>
    %84 = vector.extract_strided_slice %8 {offsets = [0, 56], sizes = [8, 8], strides = [1, 1]} : vector<8x96xf32> to vector<8x8xf32>
    %85 = vector.extract_strided_slice %8 {offsets = [0, 88], sizes = [8, 8], strides = [1, 1]} : vector<8x96xf32> to vector<8x8xf32>
    %cst_46 = arith.constant dense<0.000000e+00> : vector<8x8xf32>
    %86 = tpu.matmul %83, %84, %cst_46 {dimension_numbers = #tpu.dot_dimension_numbers<[1], [1], [0], [0], [0, 0, 1, 0], [], []>} : vector<8x8xf32>, vector<8x8xf32>, vector<8x8xf32> -> vector<8x8xf32>
    %cst_47 = arith.constant 0.353553385 : f32
    %87 = vector.broadcast %cst_47 : f32 to vector<8x8xf32>
    %88 = arith.mulf %86, %87 : vector<8x8xf32>
    %cst_48 = arith.constant dense<0xFF800000> : vector<8xf32>
    %89 = vector.multi_reduction <maximumf>, %88, %cst_48 [1] : vector<8x8xf32> to vector<8xf32>
    %90 = vector.shape_cast %89 : vector<8xf32> to vector<8x1xf32>
    %91 = vector.broadcast %90 : vector<8x1xf32> to vector<8x8xf32>
    %92 = arith.subf %88, %91 : vector<8x8xf32>
    %93 = math.exp %92 : vector<8x8xf32>
    %cst_49 = arith.constant dense<0.000000e+00> : vector<8xf32>
    %94 = vector.multi_reduction <add>, %93, %cst_49 [1] : vector<8x8xf32> to vector<8xf32>
    %95 = vector.shape_cast %94 : vector<8xf32> to vector<8x1xf32>
    %96 = tpu.reciprocal %95 : vector<8x1xf32> -> vector<8x1xf32>
    %97 = vector.broadcast %96 : vector<8x1xf32> to vector<8x8xf32>
    %98 = arith.mulf %93, %97 : vector<8x8xf32>
    %c0_50 = arith.constant 0 : index
    %c3 = arith.constant 3 : index
    %c0_51 = arith.constant 0 : index
    %c0_52 = arith.constant 0 : index
    %99 = vector.load %arg7[%c0_50, %c3, %c0_51, %c0_52] : memref<1x4x8x8xf32, #tpu.memory_space<vmem>>, vector<1x1x8x8xf32>
    %100 = vector.shape_cast %99 : vector<1x1x8x8xf32> to vector<8x8xf32>
    %101 = vector.shape_cast %98 : vector<8x8xf32> to vector<1x1x8x8xf32>
    tpu.vector_store %arg7[%c0_50, %c3, %c0_51, %c0_52], %101 {strides = array<i32>} : memref<1x4x8x8xf32, #tpu.memory_space<vmem>>, vector<1x1x8x8xf32>,
    %cst_53 = arith.constant dense<0.000000e+00> : vector<8x8xf32>
    %102 = tpu.matmul %98, %85, %cst_53 {dimension_numbers = #tpu.dot_dimension_numbers<[1], [0], [0], [1], [0, 0, 1, 1], [], []>} : vector<8x8xf32>, vector<8x8xf32>, vector<8x8xf32> -> vector<8x8xf32>
    %103 = vector.extract_strided_slice %9 {offsets = [24, 0], sizes = [8, 32], strides = [1, 1]} : vector<32x32xf32> to vector<8x32xf32>
    %cst_54 = arith.constant dense<0.000000e+00> : vector<8x32xf32>
    %104 = tpu.matmul %102, %103, %cst_54 {dimension_numbers = #tpu.dot_dimension_numbers<[1], [0], [0], [1], [0, 0, 1, 1], [], []>} : vector<8x8xf32>, vector<8x32xf32>, vector<8x32xf32> -> vector<8x32xf32>
    %c0_55 = arith.constant 0 : index
    %c0_56 = arith.constant 0 : index
    %105 = vector.load %arg8[%c0_55, %c0_56] : memref<8x32xf32, #tpu.memory_space<vmem>>, vector<8x32xf32>
    %106 = arith.addf %105, %104 : vector<8x32xf32>
    %c0_57 = arith.constant 0 : index
    %c0_58 = arith.constant 0 : index
    %107 = vector.load %arg8[%c0_57, %c0_58] : memref<8x32xf32, #tpu.memory_space<vmem>>, vector<8x32xf32>
    tpu.vector_store %arg8[%c0_57, %c0_58], %106 {strides = array<i32>} : memref<8x32xf32, #tpu.memory_space<vmem>>, vector<8x32xf32>,
    %c0_59 = arith.constant 0 : index
    %c0_60 = arith.constant 0 : index
    %108 = vector.load %arg8[%c0_59, %c0_60] : memref<8x32xf32, #tpu.memory_space<vmem>>, vector<8x32xf32>
    %c0_61 = arith.constant 0 : index
    %c0_62 = arith.constant 0 : index
    %109 = vector.load %arg5[%c0_61, %c0_62] : memref<1x32xf32, #tpu.memory_space<vmem>>, vector<1x32xf32>
    %110 = vector.shape_cast %109 : vector<1x32xf32> to vector<32xf32>
    %111 = vector.shape_cast %110 : vector<32xf32> to vector<1x32xf32>
    %112 = vector.broadcast %111 : vector<1x32xf32> to vector<8x32xf32>
    %113 = arith.addf %108, %112 : vector<8x32xf32>
    %c0_63 = arith.constant 0 : index
    %c0_64 = arith.constant 0 : index
    %c0_65 = arith.constant 0 : index
    %114 = vector.load %arg6[%c0_63, %c0_64, %c0_65] : memref<1x8x32xf32, #tpu.memory_space<vmem>>, vector<1x8x32xf32>
    %115 = vector.shape_cast %114 : vector<1x8x32xf32> to vector<8x32xf32>
    %116 = vector.shape_cast %113 : vector<8x32xf32> to vector<1x8x32xf32>
    tpu.vector_store %arg6[%c0_63, %c0_64, %c0_65], %116 {strides = array<i32>} : memref<1x8x32xf32, #tpu.memory_space<vmem>>, vector<1x8x32xf32>,
    return
  }
  func.func @transform_0(%arg0: i32) -> (i32, i32, i32) {
    %c0_i32 = arith.constant 0 : i32
    %c0_i32_0 = arith.constant 0 : i32
    %c0_i32_1 = arith.constant 0 : i32
    return %arg0, %c0_i32, %c0_i32_0 : i32, i32, i32
  }
  func.func @transform_1(%arg0: i32) -> (i32, i32) {
    %c0_i32 = arith.constant 0 : i32
    %c0_i32_0 = arith.constant 0 : i32
    %c0_i32_1 = arith.constant 0 : i32
    return %c0_i32, %c0_i32_0 : i32, i32
  }
  func.func @transform_2(%arg0: i32) -> (i32, i32) {
    %c0_i32 = arith.constant 0 : i32
    %c0_i32_0 = arith.constant 0 : i32
    %c0_i32_1 = arith.constant 0 : i32
    return %c0_i32, %c0_i32_0 : i32, i32
  }
  func.func @transform_3(%arg0: i32) -> (i32, i32) {
    %c0_i32 = arith.constant 0 : i32
    %c0_i32_0 = arith.constant 0 : i32
    %c0_i32_1 = arith.constant 0 : i32
    return %c0_i32, %c0_i32_0 : i32, i32
  }
  func.func @transform_4(%arg0: i32) -> (i32, i32) {
    %c0_i32 = arith.constant 0 : i32
    %c0_i32_0 = arith.constant 0 : i32
    %c0_i32_1 = arith.constant 0 : i32
    return %c0_i32, %c0_i32_0 : i32, i32
  }
  func.func @transform_5(%arg0: i32) -> (i32, i32, i32) {
    %c0_i32 = arith.constant 0 : i32
    %c0_i32_0 = arith.constant 0 : i32
    %c0_i32_1 = arith.constant 0 : i32
    return %arg0, %c0_i32, %c0_i32_0 : i32, i32, i32
  }
  func.func @transform_6(%arg0: i32) -> (i32, i32, i32, i32) {
    %c0_i32 = arith.constant 0 : i32
    %c0_i32_0 = arith.constant 0 : i32
    %c0_i32_1 = arith.constant 0 : i32
    %c0_i32_2 = arith.constant 0 : i32
    return %arg0, %c0_i32, %c0_i32_0, %c0_i32_1 : i32, i32, i32, i32
  }
}

</mosaic_0001>

<bundles_post_ra>
// kernel: tpu_custom_call.1
= control target key start
LH: loop header
LB: loop body
LE: loop exit
PB: predicated region body
PF: predicated region fallthrough
CT: control target
= control target key end

     0   :  { %12 = vsyncpa [#allocation4], 0  ;;  %s2404_s0 = inlined_call_operand.hbm [shape: f32[2,8,32], index: 0, kind: input, shape index: {}]   ;;  %s2405_s1 = inlined_call_operand.hbm [shape: f32[32,96], index: 1, kind: input, shape index: {}]   ;;  %s2406_s2 = inlined_call_operand.vmem [shape: f32[1,96], index: 2, kind: input, shape index: {}]   ;;  %s2407_s3 = inlined_call_operand.hbm [shape: f32[32,32], index: 3, kind: input, shape index: {}]   ;;  %s2408_s4 = inlined_call_operand.vmem [shape: f32[1,32], index: 4, kind: input, shape index: {}]   ;;  %s2409_s5 = inlined_call_operand.hbm [shape: f32[2,8,32], index: 5, kind: output, shape index: {0}]   ;;  %s2410_s6 = inlined_call_operand.hbm [shape: f32[2,4,8,8], index: 6, kind: output, shape index: {1}]  }
   0x1   :  { %14 = vsyncpa [#allocation4 + $0x1], 0 }
   0x2   :  { %15 = vsyncpa [#allocation7], 0 }
   0x3   :  { %16 = vsyncpa [#allocation5], 0 }
   0x4   :  { %18 = vsyncpa [#allocation5 + $0x1], 0 }
   0x5   :  { %19 = vsyncpa [#allocation11], 0 }
   0x6   :  { %21 = vsyncpa [#allocation11 + $0x1], 0  ;;  %s2039_s21 = smov 0   ;;  %s2041_s22 = smov 0  }
   0x7   :  { %s2043_s23 = smov 0   ;;  %s2045_s24 = smov 0  }
   0x8 LB: > { %s2060_s25 = sadd.s32 4294967295, %s1979_s24   ;;  %s1536_s26 = sadd.s32 4294967294, %s1979_s24   ;;  %s1979_s24 = sphi %s2045_s24, %s2430_s24   ;;  %s1975_s23 = sphi %s2043_s23, %s2429_s23   ;;  %s1971_s22 = sphi %s2041_s22, %s2428_s22   ;;  %s1967_s21 = sphi %s2039_s21, %s2427_s21  }
   0x9   : > { %p47_p0 = scmp.ne.s32.totalorder %s1971_s22, %s1967_s21  ;;  %p2411_p1 = scmp.eq.s32.totalorder %s2060_s25, 0 }
   0xa   : > { %p161_p3 = scmp.eq.s32.totalorder %s1536_s26, 1  ;;  %p1537_p5 = scmp.ge.s32.totalorder %s1979_s24, 1 }
   0xb   : > { %p2069_p4 = por %p2411_p1, %p47_p0  ;;  %p194_p7 = scmp.lt.s32.totalorder %s1979_s24, 3 }
   0xc   : > { %p2074_p6 = por %p161_p3, %p47_p0  ;;  %s1981_s30 = smov [#allocation6]  }
   0xd   : > { %s2414_s27 = scalar_select %p2069_p4, 1, 0 }
   0xe   : > { %s2415_s28 = scalar_select %p2074_p6, 1, 0 }
   0xf   : > { %p2079_p8 = pnand %p1537_p5, %p194_p7  ;;  %s206_s7 = sshll.u32 %s1981_s30, 4  ;;  %s2083_s7 = int_to_ptr.vmem [resolvable:$true] %s206_s7 }
  0x10   : > { %s1982_s9 = smov [#allocation8]   ;;  %s1791_s13 = scalar_lea.hbm %s2405_s1, 512 }
  0x11   : > { %p1699_p9 = pneg %p2079_p8  ;;  %s222_s10 = sshll.u32 %s1982_s9, 4  ;;  %s2094_s10 = int_to_ptr.vmem [resolvable:$true] %s222_s10 }
  0x12   : > { %p1792_p12 = scmp.ne.s32.totalorder %s2405_s1, %s1791_s13  ;;  %p1798_p5 = scmp.lt.u32.totalorder %s1791_s13, %s2405_s1 }
  0x13   : > { %p2090_p11 = pnand %p1699_p9, %p2411_p1 }
  0x15   : > { %p1793_p13 = pneg %p2090_p11 }
  0x17   : > { %p1794_p0 = pnand %p1793_p13, %p1792_p12 }
  0x19   : > { %p1795_p3 = pneg %p1794_p0 }
  0x1b   : > { %p1800_p7 = pnand %p1798_p5, %p1795_p3 }
  0x1d   : > { %1803 = shalt.err (!%p1800_p7)
}
  0x1e   : > { %s1804_s18 = scalar_lea.vmem %s2083_s7, 512  ;;  %p1812_p2 = scmp.lt.s32.totalorder %s2083_s7, %s2083_s7 }
  0x1f   : > { %p1805_p9 = scmp.ne.s32.totalorder %s2083_s7, %s1804_s18  ;;  %p1813_p12 = scmp.lt.s32.totalorder %s1804_s18, %s1804_s18 }
  0x21   : > { %p1807_p10 = pnand %p1805_p9, %p1793_p13  ;;  %p1814_p0 = por %p1813_p12, %p1812_p2 }
  0x23   : > { %p1808_p1 = pneg %p1807_p10 }
  0x25   : > { %p1815_p6 = pnand %p1814_p0, %p1808_p1 }
  0x27   : > { %1818 = shalt.err (!%p1815_p6)
}
  0x28   : > { %s1983_s19 = smov 128   ;;  %s1984_s20 = smov 8  }
  0x29   : > { %1702 = dma.hbm_to_vmem [thread:$0]  (!%p2090_p11), %s2405_s1, 512, %s2083_s7, [#allocation7], %s1983_s19, %s1983_s19, %s1984_s20  }
  0x2a   : > { %s1819_s12 = scalar_lea.hbm %s2407_s3, 512 }
  0x2b   : > { %p1820_p2 = scmp.ne.s32.totalorder %s2407_s3, %s1819_s12  ;;  %p1826_p10 = scmp.lt.u32.totalorder %s1819_s12, %s2407_s3 }
  0x2d   : > { %p1822_p1 = pnand %p1820_p2, %p1793_p13 }
  0x2f   : > { %p1823_p6 = pneg %p1822_p1 }
  0x31   : > { %p1828_p3 = pnand %p1826_p10, %p1823_p6 }
  0x33   : > { %1831 = shalt.err (!%p1828_p3)
}
  0x34   : > { %s1832_s7 = scalar_lea.vmem %s2094_s10, 512  ;;  %p1840_p12 = scmp.lt.s32.totalorder %s2094_s10, %s2094_s10 }
  0x35   : > { %p1833_p5 = scmp.ne.s32.totalorder %s2094_s10, %s1832_s7  ;;  %p1841_p0 = scmp.lt.s32.totalorder %s1832_s7, %s1832_s7 }
  0x37   : > { %p1835_p7 = pnand %p1833_p5, %p1793_p13  ;;  %p1842_p2 = por %p1841_p0, %p1840_p12 }
  0x39   : > { %p1836_p9 = pneg %p1835_p7 }
  0x3b   : > { %p1843_p1 = pnand %p1842_p2, %p1836_p9 }
  0x3d   : > { %1846 = shalt.err (!%p1843_p1)
}
  0x3e   : > { %1705 = dma.hbm_to_vmem [thread:$0]  (!%p2090_p11), %s2407_s3, 512, %s2094_s10, [#allocation7], %s1983_s19, %s1983_s19, %s1984_s20  }
  0x3f   : > { %s2149_s26 = sadd.s32 1, %s1979_s24   ;;  %s34_s8 = sadd.s32 1, %s1975_s23 }
  0x40   : > { %s31_s30 = ssub.s32 %s1979_s24, %s2149_s26  ;;  %p41_p13 = scmp.ne.s32.totalorder %s1975_s23, %s1971_s22 }
  0x41   : > { %p32_p6 = scmp.eq.s32.totalorder %s31_s30, 0  ;;  %p42_p10 = scmp.eq.s32.totalorder %s1979_s24, 0 }
  0x42   : > { %p2418_p3 = scmp.eq.s32.totalorder %s2060_s25, 1  ;;  %p1719_p7 = scmp.lt.s32.totalorder %s1979_s24, 2 }
  0x43   : > { %s2165_s11 = scalar_select %p32_p6, %s1975_s23, %s34_s8  }
  0x44   : > { %p2159_p5 = por %p2418_p3, %p41_p13  ;;  %p43_p9 = por %p42_p10, %p41_p13 }
  0x45   : > { %s239_s12 = sand.u32 1, %s1975_s23   ;;  %s1542_s10 = sshll.u32 %s1979_s24, 7 }
  0x46   : > { %s2419_s9 = scalar_select %p2159_p5, 1, 0 }
  0x47   : > { %s1541_s13 = sshll.u32 %s239_s12, 3  ;;  %s2172_s14 = scalar_lea.hbm %s2404_s0, %s1542_s10 }
  0x48   : > { %s243_s15 = scalar_lea.vmem [#allocation3], %s1541_s13  ;;  %p2176_p11 = pnand %p1719_p7, %p43_p9 }
  0x49   : > { %s250_s16 = sshll.u32 %s243_s15, 4  ;;  %s240_s17 = scalar_lea.sflag [#allocation4], %s239_s12  ;;  %s2174_s16 = int_to_ptr.vmem [resolvable:$true] %s250_s16 }
  0x4a   : > { %s1847_s18 = scalar_lea.hbm %s2172_s14, 128  ;;  %p1849_p0 = pneg %p2176_p11 }
  0x4b   : > { %p1848_p12 = scmp.ne.s32.totalorder %s2172_s14, %s1847_s18  ;;  %s1852_s13 = scalar_lea.hbm %s2404_s0, 256 }
  0x4c   : > { %p1853_p13 = scmp.lt.u32.totalorder %s2172_s14, %s2404_s0  ;;  %p1854_p6 = scmp.lt.u32.totalorder %s1852_s13, %s1847_s18 }
  0x4d   : > { %p1850_p2 = pnand %p1849_p0, %p1848_p12  ;;  %p1856_p3 = scmp.lt.u32.totalorder %s1847_s18, %s2172_s14 }
  0x4e   : > { %p1855_p10 = por %p1854_p6, %p1853_p13 }
  0x4f   : > { %p1851_p1 = pneg %p1850_p2 }
  0x50   : > { %p1857_p7 = por %p1856_p3, %p1855_p10 }
  0x52   : > { %p1858_p9 = pnand %p1857_p7, %p1851_p1 }
  0x54   : > { %1861 = shalt.err (!%p1858_p9)
}
  0x55   : > { %s1862_s12 = scalar_lea.vmem %s2174_s16, 128  ;;  %s1985_s20 = smov [#allocation3]  }
  0x56   : > { %p1863_p12 = scmp.ne.s32.totalorder %s2174_s16, %s1862_s12  ;;  %s1867_s15 = sshll.u32 %s1985_s20, 4  ;;  %s1868_s15 = int_to_ptr.vmem [resolvable:$false] %s1867_s15 }
  0x57   : > { %s1869_s8 = scalar_lea.vmem %s1868_s15, 256  ;;  %p1870_p4 = scmp.lt.s32.totalorder %s2174_s16, %s1868_s15 }
  0x58   : > { %p1865_p2 = pnand %p1863_p12, %p1849_p0  ;;  %p1871_p13 = scmp.lt.s32.totalorder %s1869_s8, %s1862_s12 }
  0x5a   : > { %p1866_p5 = pneg %p1865_p2  ;;  %p1872_p6 = por %p1871_p13, %p1870_p4 }
  0x5c   : > { %p1873_p10 = pnand %p1872_p6, %p1866_p5 }
  0x5e   : > { %1876 = shalt.err (!%p1873_p10)
}
  0x5f   : > { %1709 = dma.hbm_to_vmem [thread:$0]  (!%p2176_p11), %s2172_s14, 128, %s2174_s16, %s240_s17  }
  0x60   : > { %259 = sbr.rel (%p2079_p8) target bundleno = 3023 (0xbcf), region = 40  ;;  %s2208_s18 = sand.u32 (!%p2079_p8), 1, %s1971_s22  }
  0x61   : > { %s1544_s30 = sshll.u32 (!%p2079_p8), %s2208_s18, 3  ;;  %s262_s13 = scalar_lea.sflag (!%p2079_p8), [#allocation4], %s2208_s18 }
  0x62   : > { %s265_s10 = scalar_lea.vmem (!%p2079_p8), [#allocation3], %s1544_s30  ;;  %p2421_p4 = scmp.ne.s32.totalorder (!%p2079_p8), %s2414_s27, 0 }
  0x67   : > { %1950 = dma.done.wait (%p2421_p4), %s262_s13, 128  }
  0x68   : > { %1952 = vsyncadd (%p2421_p4), %s262_s13, 4294967168  ;;  %p2422_p5 = scmp.eq.s32.totalorder %s2060_s25, 0 }
  0x6a   : > { %1954 = dma.done.wait (%p2422_p5), [#allocation7], 1024   ;;  %p2423_p8 = pmov %p2422_p5 }
  0x6b   : > { %v1986_v0 = vmov 0.0|0.0   ;;  %vm1987_vm0 = vmmov 0   ;;  %v1988_v1 = vmov 0.0   ;;  %v308_v2 = vld [vmem:[#allocation6] sm:$0xff]  ;;  %v309_v3 = vld [vmem:[#allocation6 + $0x8] sm:$0xff]  ;;  %v310_v4 = vld [vmem:[#allocation6 + $0x10] sm:$0xff] }
  0x6c   : > { %1956 = vsyncadd (%p2423_p8), [#allocation7], 4294966272  ;;  %1679 = vmatprep.subr.bf16.mxu0 %v1986_v0  ;;  %1616 = vmatprep.mubr.msk.f32.mxu0 %vm1987_vm0, %v1988_v1  ;;  %v1680_v5 = vpack.c.bf16 %v309_v3, %v308_v2  ;;  %v311_v6 = vld [vmem:[#allocation6 + $0x18] sm:$0xff]  ;;  %vm319_vm1 = vcmask 261120   ;;  %v1549_v9 = vld [vmem:[%s2406_s2] ss:$0 sm:$0xff] }
  0x6d   : > { %1619 = vmatprep.subr.mxu1 %v1988_v1  ;;  %1621 = vmatprep.mubr.msk.f32.mxu1 %vm1987_vm0, %v1988_v1  ;;  %v1683_v7 = vpack.c.bf16 %v311_v6, %v310_v4  ;;  %v307_v8 = vld [vmem:[%s265_s10] sm:$0xff]  ;;  %s1989_s14 = smov 64   ;;  %s1990_s16 = smov 96   ;;  %vm400_vm2 = vcmask 64512   ;;  %v393_v24 = vld [vmem:[#allocation8] sm:$0xff]  ;;  %v394_v49 = vld [vmem:[#allocation8 + $0x8] sm:$0xff] }
  0x6e   : > { %1681 = vmatpush3.bf16.msra.mxu0 %v1680_v5  ;;  %s1991_s7 = smov 88   ;;  %s1992_s17 = smov 56  }
  0x6f   : > { %1682 = vmatprep.subr.bf16.mxu0 %v1986_v0  ;;  %s1993_s19 = smov 80   ;;  %s1994_s12 = smov 120  }
  0x70   : > { %s1548_s20 = sshll.u32 %s2208_s18, 5  ;;  %s1995_s8 = smov 112  }
  0x71   : > { %s2253_s15 = scalar_lea.vmem [#allocation10], %s1548_s20  ;;  %s1996_s13 = smov 48  }
  0x72   : > { %1684 = vmatpush3.bf16.msra.mxu0 %v1683_v7  ;;  %s1997_s10 = smov 72   ;;  %s1998_s27 = smov 104  }
  0x73   : > { %1629 = vmatprep.subr.mxu0 %v1988_v1  ;;  %s1999_s29 = smov 40   ;;  %p2424_p0 = scmp.ne.s32.totalorder %s2419_s9, 0 }
  0x75   : > { %1617 = vmatmul.mubr.msk.f32.vlgmr.msra.gmra.mrb[0].mxu0 %vm319_vm1, %v307_v8  ;;  %v395_v8 = vld [vmem:[#allocation8 + $0x10] sm:$0xff] }
  0x76   : > { %1631 = vmatprep.mubr.msk.f32.mxu0 %vm1987_vm0, %v1988_v1  ;;  %1630 = vmatpush3.msra.mxu0 %v393_v24 }
  0x77   : > { %1639 = vmatprep.subr.mxu0 %v1988_v1 }
 0x148   : > { %v389_v10 = vpop.f32.mrb[0].mxu0 }
 0x149   : > { %v2234_v11 = vadd.f32 %v1549_v9, %v389_v10  ;;  %v1618_v12 = vpop.f32.mrb[1].mxu0 }
 0x14b   : > { %488 = vrot.lane.b32.xlu1 %v2234_v11, %s1989_s14  ;;  %398 = vrot.lane.b32.xlu0 %v2234_v11, %s1990_s16  ;;  %s1578_s14 = sshll.u32 %s2060_s25, 9  ;;  %s1412_s16 = sshll.u32 %s2253_s15, 4  ;;  %s2323_s16 = int_to_ptr.vmem [resolvable:$true] %s1412_s16 }
 0x14c   : > { %s1877_s20 = scalar_lea.vmem %s2323_s16, 512 }
 0x14d   : > { %p1878_p11 = scmp.ne.s32.totalorder %s2323_s16, %s1877_s20 }
 0x14f   : > { %640 = vrot.lane.b32.xlu1 %v2234_v11, %s1991_s7  ;;  %p1879_p1 = pnand %p1878_p11, %p2424_p0 }
 0x151   : > { %p1880_p3 = pneg %p1879_p1 }
 0x1bd   : > { %v399_v13 = vpop.permute.xlu0 %398  ;;  %v489_v14 = vpop.permute.xlu1 %488 }
 0x1be   : > { %1620 = vmatpush3.xpose.msk.msra.mxu1 %vm400_vm2, %v399_v13 }
 0x1bf   : > { %1624 = vmatprep.subr.mxu1 %v1988_v1 }
 0x1c1   : > { %1622 = vmatmul.mubr.msk.f32.vlgmr.msra.gmra.mrb[0].mxu1 %vm400_vm2, %v2234_v11  ;;  %v641_v25 = vpop.permute.xlu1 %640 }
 0x1c2   : > { %1625 = vmatpush3.msra.mxu1 %v489_v14  ;;  %1626 = vmatprep.mubr.msk.f32.mxu1 %vm1987_vm0, %v1988_v1 }
 0x1c3   : > { %1634 = vmatprep.subr.mxu1 %v1988_v1 }
 0x294   : > { %v471_v15 = vpop.f32.mrb[0].mxu1 }
 0x295   : > { %v475_v16 = vmul.f32 0.35355338, %v471_v15  ;;  %v1623_v17 = vpop.f32.mrb[1].mxu1 }
 0x297   : > { %v476_v18 = vsel %vm400_vm2, %v475_v16, -inf }
 0x298   : > { %477 = vmax.xlane.f32.xlu0 %v476_v18 }
 0x2ae   : > { %730 = vrot.lane.b32.xlu0 %v2234_v11, %s1992_s17 }
 0x2b2   : > { %884 = vrot.lane.b32.xlu0 %v2234_v11, %s1993_s19  ;;  %s2321_s19 = scalar_lea.hbm %s2410_s6, %s1578_s14 }
 0x325   : > { %v478_v19 = vpop.xlane.xlu0 %477 }
 0x326   : > { %v479_v20 = vsub.f32 %v475_v16, %v478_v19 }
 0x328   : > { %v480_v21 = vmul.f32 1.442695, %v479_v20 }
 0x329   : > { %v731_v31 = vpop.permute.xlu0 %730 }
 0x32a   : > { %1775 = vpow2.f32 %v480_v21  ;;  %v396_v21 = vld [vmem:[#allocation8 + $0x18] sm:$0xff] }
 0x32d   : > { %v885_v44 = vpop.permute.xlu0 %884 }
 0x334   : > { %v1776_v22 = vpop.eup %1775 }
 0x335   : > { %v482_v23 = vsel %vm400_vm2, %v1776_v22, 0.0 }
 0x336   : > { %483 = vadd.xlane.f32.xlu1 %v482_v23 }
 0x347   : > { %638 = vrot.lane.b32.xlu1 %v2234_v11, %s1994_s12  ;;  %s1386_s12 = scalar_lea.sflag [#allocation11], %s2208_s18 }
 0x3c3   : > { %v484_v26 = vpop.xlane.xlu1 %483 }
 0x3c4   : > { %1777 = vrcp.f32 %v484_v26 }
 0x3c7   : > { %v639_v29 = vpop.permute.xlu1 %638 }
 0x3ce   : > { %v1778_v27 = vpop.eup %1777 }
 0x3cf   : > { %v486_v28 = vmul.f32 %v1778_v27, %v1776_v22 }
 0x3d1   : > { %487 = vst.msk [vmem:[%s2253_s15] sm:$0xff] %vm400_vm2, %v486_v28  ;;  %1627 = vmatmul.mubr.msk.f32.vlgmr.msra.gmra.mrb[2].mxu1 %vm400_vm2, %v486_v28 }
 0x3d2   : > { %1635 = vmatpush3.xpose.msk.msra.mxu1 %vm400_vm2, %v641_v25  ;;  %1636 = vmatprep.mubr.msk.f32.mxu1 %vm1987_vm0, %v1988_v1 }
 0x3d3   : > { %1644 = vmatprep.subr.mxu1 %v1988_v1 }
 0x3d5   : > { %1637 = vmatmul.mubr.msk.f32.vlgmr.msra.gmra.mrb[4].mxu1 %vm400_vm2, %v639_v29 }
 0x3d6   : > { %1646 = vmatprep.mubr.msk.f32.mxu1 %vm1987_vm0, %v1988_v1  ;;  %1645 = vmatpush3.msra.mxu1 %v394_v49 }
 0x3d7   : > { %1654 = vmatprep.subr.mxu1 %v1988_v1 }
 0x4a4   : > { %v560_v30 = vpop.f32.mrb[2].mxu1 }
 0x4a5   : > { %v1628_v32 = vpop.f32.mrb[3].mxu1  ;;  %1632 = vmatmul.mubr.msk.f32.vlgmr.msra.gmra.mrb[2].mxu0 %vm400_vm2, %v560_v30 }
 0x4a6   : > { %1640 = vmatpush3.msra.mxu0 %v731_v31  ;;  %1641 = vmatprep.mubr.msk.f32.mxu0 %vm1987_vm0, %v1988_v1 }
 0x4a7   : > { %1649 = vmatprep.subr.mxu0 %v1988_v1 }
 0x4a8   : > { %v712_v33 = vpop.f32.mrb[4].mxu1 }
 0x4a9   : > { %v716_v34 = vmul.f32 0.35355338, %v712_v33  ;;  %v1638_v35 = vpop.f32.mrb[5].mxu1 }
 0x4ab   : > { %v717_v36 = vsel %vm400_vm2, %v716_v34, -inf }
 0x4ac   : > { %718 = vmax.xlane.f32.xlu1 %v717_v36 }
 0x539   : > { %v719_v37 = vpop.xlane.xlu1 %718 }
 0x53a   : > { %v720_v38 = vsub.f32 %v716_v34, %v719_v37 }
 0x53c   : > { %v721_v39 = vmul.f32 1.442695, %v720_v38 }
 0x53e   : > { %1779 = vpow2.f32 %v721_v39 }
 0x548   : > { %v1780_v40 = vpop.eup %1779 }
 0x549   : > { %v723_v41 = vsel %vm400_vm2, %v1780_v40, 0.0 }
 0x54a   : > { %724 = vadd.xlane.f32.xlu0 %v723_v41 }
 0x560   : > { %882 = vrot.lane.b32.xlu0 %v2234_v11, %s1995_s8  ;;  %s2000_s8 = smov [#allocation10]  }
 0x578   : > { %v633_v42 = vpop.f32.mrb[2].mxu0 }
 0x579   : > { %637 = vst.msk [vmem:[#allocation2] sm:$0xff] %vm319_vm1, %v633_v42  ;;  %v1633_v43 = vpop.f32.mrb[3].mxu0 }
 0x580   : > { %v879_v63 = vld [vmem:[#allocation2] sm:$0xff] }
 0x5d7   : > { %v725_v45 = vpop.xlane.xlu0 %724 }
 0x5d8   : > { %1781 = vrcp.f32 %v725_v45 }
 0x5db   : > { %v883_v48 = vpop.permute.xlu0 %882 }
 0x5e2   : > { %v1782_v46 = vpop.eup %1781 }
 0x5e3   : > { %v727_v47 = vmul.f32 %v1782_v46, %v1780_v40 }
 0x5e5   : > { %1557 = vst.msk [vmem:[%s2253_s15 + $0x8] sm:$0xff] %vm400_vm2, %v727_v47  ;;  %1642 = vmatmul.mubr.msk.f32.vlgmr.msra.gmra.mrb[4].mxu0 %vm400_vm2, %v727_v47 }
 0x5e6   : > { %1650 = vmatpush3.xpose.msk.msra.mxu0 %vm400_vm2, %v885_v44  ;;  %1651 = vmatprep.mubr.msk.f32.mxu0 %vm1987_vm0, %v1988_v1 }
 0x5e7   : > { %1659 = vmatprep.subr.mxu0 %v1988_v1 }
 0x5e9   : > { %1652 = vmatmul.mubr.msk.f32.vlgmr.msra.gmra.mrb[6].mxu0 %vm400_vm2, %v883_v48 }
 0x5ea   : > { %1661 = vmatprep.mubr.msk.f32.mxu0 %vm1987_vm0, %v1988_v1  ;;  %1660 = vmatpush3.msra.mxu0 %v395_v8 }
 0x5eb   : > { %1669 = vmatprep.subr.mxu0 %v1988_v1 }
 0x6b8   : > { %v802_v50 = vpop.f32.mrb[4].mxu0 }
 0x6b9   : > { %v1643_v51 = vpop.f32.mrb[5].mxu0  ;;  %1647 = vmatmul.mubr.msk.f32.vlgmr.msra.gmra.mrb[6].mxu1 %vm400_vm2, %v802_v50 }
 0x6ba   : > { %1656 = vmatprep.mubr.msk.f32.mxu1 %vm1987_vm0, %v1988_v1 }
 0x6bc   : > { %v956_v52 = vpop.f32.mrb[6].mxu0 }
 0x6bd   : > { %v960_v53 = vmul.f32 0.35355338, %v956_v52  ;;  %v1653_v54 = vpop.f32.mrb[7].mxu0 }
 0x6bf   : > { %v961_v55 = vsel %vm400_vm2, %v960_v53, -inf }
 0x6c0   : > { %962 = vmax.xlane.f32.xlu1 %v961_v55 }
 0x6d1   : > { %974 = vrot.lane.b32.xlu1 %v2234_v11, %s1996_s13  ;;  %s1881_s13 = sshll.u32 %s2000_s8, 4  ;;  %s1882_s13 = int_to_ptr.vmem [resolvable:$false] %s1881_s13 }
 0x6d2   : > { %p1884_p7 = scmp.lt.s32.totalorder %s2323_s16, %s1882_s13 }
 0x6d5   : > { %1128 = vrot.lane.b32.xlu1 %v2234_v11, %s1997_s10 }
 0x6d9   : > { %1126 = vrot.lane.b32.xlu1 %v2234_v11, %s1998_s27 }
 0x74d   : > { %v963_v56 = vpop.xlane.xlu1 %962 }
 0x74e   : > { %v964_v57 = vsub.f32 %v960_v53, %v963_v56 }
 0x750   : > { %v965_v58 = vmul.f32 1.442695, %v964_v57 }
 0x751   : > { %v975_v59 = vpop.permute.xlu1 %974 }
 0x752   : > { %1783 = vpow2.f32 %v965_v58  ;;  %1655 = vmatpush3.msra.mxu1 %v975_v59 }
 0x753   : > { %1664 = vmatprep.subr.mxu1 %v1988_v1 }
 0x755   : > { %v1129_v5 = vpop.permute.xlu1 %1128 }
 0x759   : > { %v1127_v7 = vpop.permute.xlu1 %1126 }
 0x75c   : > { %v1784_v60 = vpop.eup %1783 }
 0x75d   : > { %v967_v61 = vsel %vm400_vm2, %v1784_v60, 0.0 }
 0x75e   : > { %968 = vadd.xlane.f32.xlu0 %v967_v61 }
 0x78c   : > { %v875_v62 = vpop.f32.mrb[6].mxu1 }
 0x78d   : > { %v880_v0 = vadd.f32 %v879_v63, %v875_v62  ;;  %v1648_v2 = vpop.f32.mrb[7].mxu1 }
 0x78f   : > { %881 = vst.msk [vmem:[#allocation2] sm:$0xff] %vm319_vm1, %v880_v0 }
 0x796   : > { %v1123_v22 = vld [vmem:[#allocation2] sm:$0xff] }
 0x7eb   : > { %v969_v3 = vpop.xlane.xlu0 %968 }
 0x7ec   : > { %1785 = vrcp.f32 %v969_v3 }
 0x7f6   : > { %v1786_v4 = vpop.eup %1785 }
 0x7f7   : > { %v971_v6 = vmul.f32 %v1786_v4, %v1784_v60 }
 0x7f9   : > { %1562 = vst.msk [vmem:[%s2253_s15 + $0x10] sm:$0xff] %vm400_vm2, %v971_v6  ;;  %1657 = vmatmul.mubr.msk.f32.vlgmr.msra.gmra.mrb[8].mxu1 %vm400_vm2, %v971_v6 }
 0x7fa   : > { %1665 = vmatpush3.xpose.msk.msra.mxu1 %vm400_vm2, %v1129_v5  ;;  %1666 = vmatprep.mubr.msk.f32.mxu1 %vm1987_vm0, %v1988_v1 }
 0x7fb   : > { %1674 = vmatprep.subr.mxu1 %v1988_v1 }
 0x7fd   : > { %1667 = vmatmul.mubr.msk.f32.vlgmr.msra.gmra.mrb[10].mxu1 %vm400_vm2, %v1127_v7 }
 0x7fe   : > { %1676 = vmatprep.mubr.msk.f32.mxu1 %vm1987_vm0, %v1988_v1  ;;  %1675 = vmatpush3.msra.mxu1 %v396_v21 }
 0x8cc   : > { %v1046_v9 = vpop.f32.mrb[8].mxu1 }
 0x8cd   : > { %v1658_v10 = vpop.f32.mrb[9].mxu1  ;;  %1662 = vmatmul.mubr.msk.f32.vlgmr.msra.gmra.mrb[8].mxu0 %vm400_vm2, %v1046_v9 }
 0x8ce   : > { %1671 = vmatprep.mubr.msk.f32.mxu0 %vm1987_vm0, %v1988_v1 }
 0x8d0   : > { %v1200_v12 = vpop.f32.mrb[10].mxu1 }
 0x8d1   : > { %v1204_v13 = vmul.f32 0.35355338, %v1200_v12  ;;  %v1668_v14 = vpop.f32.mrb[11].mxu1 }
 0x8d3   : > { %v1205_v15 = vsel %vm400_vm2, %v1204_v13, -inf }
 0x8d4   : > { %1206 = vmax.xlane.f32.xlu1 %v1205_v15 }
 0x961   : > { %v1207_v16 = vpop.xlane.xlu1 %1206 }
 0x962   : > { %v1208_v17 = vsub.f32 %v1204_v13, %v1207_v16 }
 0x964   : > { %v1209_v18 = vmul.f32 1.442695, %v1208_v17 }
 0x966   : > { %1787 = vpow2.f32 %v1209_v18 }
 0x970   : > { %v1788_v19 = vpop.eup %1787 }
 0x971   : > { %v1211_v20 = vsel %vm400_vm2, %v1788_v19, 0.0 }
 0x972   : > { %1212 = vadd.xlane.f32.xlu0 %v1211_v20 }
 0x988   : > { %1218 = vrot.lane.b32.xlu0 %v2234_v11, %s1999_s29 }
 0x9a0   : > { %v1119_v1 = vpop.f32.mrb[8].mxu0 }
 0x9a1   : > { %v1124_v23 = vadd.f32 %v1123_v22, %v1119_v1  ;;  %v1663_v24 = vpop.f32.mrb[9].mxu0 }
 0x9a3   : > { %1125 = vst.msk [vmem:[#allocation2] sm:$0xff] %vm319_vm1, %v1124_v23 }
 0x9ff   : > { %v1213_v25 = vpop.xlane.xlu0 %1212 }
 0xa00   : > { %1789 = vrcp.f32 %v1213_v25 }
 0xa03   : > { %v1219_v26 = vpop.permute.xlu0 %1218 }
 0xa04   : > { %1670 = vmatpush3.msra.mxu0 %v1219_v26 }
 0xa0a   : > { %v1790_v27 = vpop.eup %1789 }
 0xa0b   : > { %v1215_v28 = vmul.f32 %v1790_v27, %v1788_v19 }
 0xa0d   : > { %1567 = vst.msk [vmem:[%s2253_s15 + $0x18] sm:$0xff] %vm400_vm2, %v1215_v28  ;;  %1672 = vmatmul.mubr.msk.f32.vlgmr.msra.gmra.mrb[10].mxu0 %vm400_vm2, %v1215_v28  ;;  %s1883_s15 = scalar_lea.vmem %s1882_s13, 1024 }
 0xa0e   : > { %p1885_p9 = scmp.lt.s32.totalorder %s1883_s15, %s1877_s20 }
 0xa10   : > { %p1886_p12 = por %p1885_p9, %p1884_p7 }
 0xa12   : > { %p1887_p2 = pnand %p1886_p12, %p1880_p3 }
 0xae0   : > { %v1290_v11 = vpop.f32.mrb[10].mxu0 }
 0xae1   : > { %v1673_v29 = vpop.f32.mrb[11].mxu0  ;;  %1677 = vmatmul.mubr.msk.f32.vlgmr.msra.gmra.mrb[12].mxu1 %vm400_vm2, %v1290_v11 }
 0xae2   : > { %1890 = shalt.err (!%p1887_p2)
}
 0xae3   : > { %s1891_s10 = scalar_lea.hbm %s2321_s19, 512  ;;  %s1895_s14 = scalar_lea.hbm %s2410_s6, 1024 }
 0xae4   : > { %p1892_p13 = scmp.ne.s32.totalorder %s2321_s19, %s1891_s10  ;;  %p1896_p4 = scmp.lt.u32.totalorder %s2321_s19, %s2410_s6 }
 0xae5   : > { %p1897_p5 = scmp.lt.u32.totalorder %s1895_s14, %s1891_s10  ;;  %p1899_p11 = scmp.lt.u32.totalorder %s1891_s10, %s2321_s19 }
 0xae6   : > { %p1893_p6 = pnand %p1892_p13, %p2424_p0 }
 0xae7   : > { %p1898_p8 = por %p1897_p5, %p1896_p4 }
 0xae8   : > { %p1894_p10 = pneg %p1893_p6 }
 0xae9   : > { %p1900_p1 = por %p1899_p11, %p1898_p8 }
 0xaeb   : > { %p1901_p3 = pnand %p1900_p1, %p1894_p10 }
 0xaed   : > { %1904 = shalt.err (!%p1901_p3)
}
 0xaee   : > { %s2001_s20 = smov 128   ;;  %s2002_s8 = smov 8   ;;  %v1367_v31 = vld [vmem:[#allocation2] sm:$0xff] }
 0xaef   : > { %1696 = dma.vmem_to_hbm [thread:$0]  (%p2424_p0), %s2323_s16, 512, %s2321_s19, %s1386_s12, %s2001_s20, %s2001_s20, %s2002_s8  }
 0xaf0   : > { %v1570_v34 = vld [vmem:[%s2408_s4] ss:$0 sm:$0xff]  ;;  %s1573_s10 = sshll.u32 %s2060_s25, 7  ;;  %s299_s27 = scalar_lea.vmem [#allocation9], %s1544_s30 }
 0xaf1   : > { %s1399_s29 = sshll.u32 %s299_s27, 4  ;;  %s2359_s16 = scalar_lea.hbm %s2409_s5, %s1573_s10  ;;  %s2361_s29 = int_to_ptr.vmem [resolvable:$true] %s1399_s29 }
 0xaf2   : > { %s1381_s19 = scalar_lea.sflag [#allocation5], %s2208_s18  ;;  %s1905_s12 = scalar_lea.vmem %s2361_s29, 128 }
 0xaf3   : > { %p1906_p7 = scmp.ne.s32.totalorder %s2361_s29, %s1905_s12  ;;  %s2003_s25 = smov [#allocation9]  }
 0xaf4   : > { %s1909_s30 = sshll.u32 %s2003_s25, 4  ;;  %s1910_s30 = int_to_ptr.vmem [resolvable:$false] %s1909_s30 }
 0xaf5   : > { %p1907_p9 = pnand %p1906_p7, %p2424_p0  ;;  %s1911_s17 = scalar_lea.vmem %s1910_s30, 256 }
 0xaf6   : > { %p1912_p2 = scmp.lt.s32.totalorder %s2361_s29, %s1910_s30  ;;  %p1913_p13 = scmp.lt.s32.totalorder %s1911_s17, %s1905_s12 }
 0xaf7   : > { %p1908_p12 = pneg %p1907_p9 }
 0xaf8   : > { %p1914_p6 = por %p1913_p13, %p1912_p2 }
 0xafa   : > { %p1915_p10 = pnand %p1914_p6, %p1908_p12 }
 0xbb4   : > { %v1363_v30 = vpop.f32.mrb[12].mxu1 }
 0xbb5   : > { %v1368_v32 = vadd.f32 %v1367_v31, %v1363_v30  ;;  %v1678_v33 = vpop.f32.mrb[13].mxu1 }
 0xbb7   : > { %1369 = vst.msk [vmem:[#allocation2] sm:$0xff] %vm319_vm1, %v1368_v32 }
 0xbbe   : > { %v1370_v35 = vld [vmem:[#allocation2] sm:$0xff] }
 0xbbf   : > { %v1378_v36 = vadd.f32 %v1570_v34, %v1370_v35 }
 0xbc1   : > { %1379 = vst.msk [vmem:[%s299_s27] sm:$0xff] %vm319_vm1, %v1378_v36 }
 0xbc2   : > { %1918 = shalt.err (!%p1915_p10)
}
 0xbc3   : > { %s1919_s18 = scalar_lea.hbm %s2359_s16, 128  ;;  %s1923_s13 = scalar_lea.hbm %s2409_s5, 256 }
 0xbc4   : > { %p1920_p4 = scmp.ne.s32.totalorder %s2359_s16, %s1919_s18  ;;  %p1924_p11 = scmp.lt.u32.totalorder %s2359_s16, %s2409_s5 }
 0xbc5   : > { %p1925_p1 = scmp.lt.u32.totalorder %s1923_s13, %s1919_s18  ;;  %p1927_p7 = scmp.lt.u32.totalorder %s1919_s18, %s2359_s16 }
 0xbc6   : > { %p1921_p5 = pnand %p1920_p4, %p2424_p0 }
 0xbc7   : > { %p1926_p3 = por %p1925_p1, %p1924_p11 }
 0xbc8   : > { %p1922_p8 = pneg %p1921_p5 }
 0xbc9   : > { %p1928_p9 = por %p1927_p7, %p1926_p3 }
 0xbcb   : > { %p1929_p12 = pnand %p1928_p9, %p1922_p8 }
 0xbcd   : > { %1932 = shalt.err (!%p1929_p12)
}
 0xbce   : > { %1695 = dma.vmem_to_hbm [thread:$0]  (%p2424_p0), %s2361_s29, 128, %s2359_s16, %s1381_s19  }
 0xbcf PF: > { %s1427_s27 = sand.u32 1, %s1967_s21   ;;  %p2425_p2 = scmp.ne.s32.totalorder %s2415_s28, 0 }
 0xbd0   : > { %p2426_p13 = scmp.ge.s32.totalorder %s1979_s24, 2  ;;  %s1428_s14 = scalar_lea.sflag [#allocation5], %s1427_s27 }
 0xbd2   : > { %p1711_p6 = pnand %p2426_p13, %p2425_p2 }
 0xbd4   : > { %1958 = dma.done.wait (!%p1711_p6), %s1428_s14, 128  }
 0xbd5   : > { %1960 = vsyncadd (!%p1711_p6), %s1428_s14, 4294967168  ;;  %s1437_s7 = scalar_lea.sflag [#allocation11], %s1427_s27 }
 0xbd6   : > { %1962 = dma.done.wait (!%p1711_p6), %s1437_s7, 512  }
 0xbd7   : > { %1964 = vsyncadd (!%p1711_p6), %s1437_s7, 4294966784  ;;  %p24_p0 = scmp.ge.s32.totalorder %s2149_s26, 4   ;;  %s2427_s21 = smov %s1971_s22 }
 0xbd8   : > { %s2428_s22 = smov %s1975_s23  ;;  %s2429_s23 = smov %s2165_s11 }
 0xbd9   : > { %s2430_s24 = smov %s2149_s26  ;;  %26 = sbr.rel (!%p24_p0) target bundleno = 8 (0x8), region = 113 }
 0xbe0   :  { %1442 = vsyncpa [#allocation4], 1 }
 0xbe1   :  { %1444 = vsyncpa [#allocation4 + $0x1], 1 }
 0xbe2   :  { %1445 = vsyncpa [#allocation7], 1 }
 0xbe3   :  { %1446 = vsyncpa [#allocation5], 1 }
 0xbe4   :  { %1448 = vsyncpa [#allocation5 + $0x1], 1 }
 0xbe5   :  { %1449 = vsyncpa [#allocation11], 1 }
 0xbe6   :  { %1451 = vsyncpa [#allocation11 + $0x1], 1 }

</bundles_post_ra>
